<compile_context>
chip_gen: v7x
topology: tpu7x:2x2x1
jax: 0.10.0
libtpu: 0.0.40
codegen_flags: <defaults>
</compile_context>

<pallas_src>
import math
import functools

import jax
import jax.numpy as jnp
from jax import lax
from jax.experimental import pallas as pl
from jax.experimental.pallas import tpu as pltpu


# ---------------------------------------------------------------------------
# Linear layer kernel:  y = x @ W + b   (bf16 inputs on the MXU, f32 accumulate)
# ---------------------------------------------------------------------------
def linear_kernel(x_ref, w_ref, b_ref, o_ref):
    x = x_ref[...].astype(jnp.bfloat16)
    acc = jnp.dot(x, w_ref[...], preferred_element_type=jnp.float32)
    o_ref[...] = (acc + b_ref[...]).astype(o_ref.dtype)


def linear(x2d, w_bf16, b_f32, out_dtype, *, block_m=256):
    """x2d: (M, K), w_bf16: (K, N) bf16, b_f32: (1, N) f32 -> (M, N) out_dtype."""
    M, K = x2d.shape
    _, N = w_bf16.shape
    tm = min(M, block_m)
    return pl.pallas_call(
        linear_kernel,
        out_shape=jax.ShapeDtypeStruct((M, N), out_dtype),
        grid_spec=pltpu.PrefetchScalarGridSpec(
            num_scalar_prefetch=0,
            grid=(pl.cdiv(M, tm),),
            in_specs=[
                pl.BlockSpec((tm, K), lambda i: (i, 0)),   # activations (row tile)
                pl.BlockSpec((K, N), lambda i: (0, 0)),    # weight (resident)
                pl.BlockSpec((1, N), lambda i: (0, 0)),    # bias
            ],
            out_specs=pl.BlockSpec((tm, N), lambda i: (i, 0)),
        ),
        compiler_params=pltpu.CompilerParams(
            dimension_semantics=("parallel",)),
    )(x2d, w_bf16, b_f32)


# ---------------------------------------------------------------------------
# Flash-style causal attention kernel (head-batched, online softmax).
# Grid: (B, num_q_tiles, num_kv_tiles); kv axis is the reduction ("arbitrary").
# ---------------------------------------------------------------------------
def flash_attn_kernel(q_ref, k_ref, v_ref, o_ref, m_scr, l_scr, acc_scr,
                      *, scale, block_q, block_kv):
    i = pl.program_id(1)   # query tile
    j = pl.program_id(2)   # kv tile (innermost)

    @pl.when(j == 0)
    def _init():
        m_scr[...] = jnp.full_like(m_scr, -1e30)
        l_scr[...] = jnp.zeros_like(l_scr)
        acc_scr[...] = jnp.zeros_like(acc_scr)

    # Causal block skip: kv tiles strictly above the diagonal contribute nothing.
    @pl.when(j <= i)
    def _compute():
        # Fold 1/sqrt(D) into q (S*D multiplies instead of S*S on the logits).
        q = (q_ref[...].astype(jnp.float32) * scale).astype(jnp.bfloat16)  # (H, tq, D)
        k = k_ref[...]                                                     # (H, tkv, D)
        v = v_ref[...]                                                     # (H, tkv, D)

        # Head-batched QK^T on the MXU, f32 accumulate.
        s = jnp.einsum("hqd,hkd->hqk", q, k,
                       preferred_element_type=jnp.float32)                 # (H, tq, tkv)

        # Per-block causal mask in global coordinates (only bites on the
        # diagonal block since j <= i and tq == tkv).
        row = i * block_q + lax.broadcasted_iota(jnp.int32, s.shape, 1)
        col = j * block_kv + lax.broadcasted_iota(jnp.int32, s.shape, 2)
        s = jnp.where(col <= row, s, -1e30)

        # Online softmax update.
        m_prev = m_scr[...]
        m_new = jnp.maximum(m_prev, s.max(axis=-1, keepdims=True))
        alpha = jnp.exp(m_prev - m_new)
        p = jnp.exp(s - m_new)

        l_scr[...] = alpha * l_scr[...] + p.sum(axis=-1, keepdims=True)
        acc_scr[...] = alpha * acc_scr[...] + jnp.einsum(
            "hqk,hkd->hqd", p.astype(jnp.bfloat16), v,
            preferred_element_type=jnp.float32)
        m_scr[...] = m_new

    @pl.when(j == pl.num_programs(2) - 1)
    def _finalize():
        inv_l = pl.reciprocal(l_scr[...], approx=True)   # EUP slot, nearly free
        o_ref[...] = (acc_scr[...] * inv_l).astype(o_ref.dtype)


def flash_attention(q, k, v, *, block=128):
    """q, k, v: (B, H, S, D) bf16 -> (B, H, S, D) bf16."""
    B, H, S, D = q.shape
    scale = 1.0 / math.sqrt(D)
    blk = min(S, block)
    assert S % blk == 0, "sequence length must divide the attention tile"
    nq = S // blk
    nkv = S // blk

    kernel = functools.partial(flash_attn_kernel, scale=scale,
                               block_q=blk, block_kv=blk)
    q_spec = pl.BlockSpec((pl.Squeezed(), H, blk, D), lambda b, i, j: (b, 0, i, 0))
    kv_spec = pl.BlockSpec((pl.Squeezed(), H, blk, D), lambda b, i, j: (b, 0, j, 0))
    o_spec = pl.BlockSpec((pl.Squeezed(), H, blk, D), lambda b, i, j: (b, 0, i, 0))

    return pl.pallas_call(
        kernel,
        out_shape=jax.ShapeDtypeStruct((B, H, S, D), q.dtype),
        grid_spec=pltpu.PrefetchScalarGridSpec(
            num_scalar_prefetch=0,
            grid=(B, nq, nkv),
            in_specs=[q_spec, kv_spec, kv_spec],
            out_specs=o_spec,
            scratch_shapes=[
                pltpu.VMEM((H, blk, 1), jnp.float32),   # running max m
                pltpu.VMEM((H, blk, 1), jnp.float32),   # running sum l
                pltpu.VMEM((H, blk, D), jnp.float32),   # output accumulator
            ],
        ),
        compiler_params=pltpu.CompilerParams(
            dimension_semantics=("parallel", "parallel", "arbitrary")),
    )(q, k, v)


# ---------------------------------------------------------------------------
# Full module forward
# ---------------------------------------------------------------------------
def multihead_attention(x, params, num_heads):
    """x: (B, S, E) f32. params: (E,E) weights stored (in,out) and (1,E) biases."""
    B, S, E = x.shape
    H = num_heads
    D = E // H

    # Fuse Q/K/V weights & biases (one wide MXU matmul, one weight DMA), bf16.
    wqkv = jnp.concatenate(
        [params["wq"], params["wk"], params["wv"]], axis=1).astype(jnp.bfloat16)
    bqkv = jnp.concatenate(
        [params["bq"], params["bk"], params["bv"]], axis=1).astype(jnp.float32)
    wp = params["wp"].astype(jnp.bfloat16)
    bp = params["bp"].astype(jnp.float32)

    # 1) fused QKV projection (bf16 activations out, halves intermediate HBM bytes)
    qkv = linear(x.reshape(B * S, E), wqkv, bqkv, jnp.bfloat16)      # (B*S, 3E)

    # Layout plumbing (XLA): (B*S, 3E) -> three (B, H, S, D) tensors.
    qkv = qkv.reshape(B, S, 3, H, D)
    q = qkv[:, :, 0].transpose(0, 2, 1, 3)
    k = qkv[:, :, 1].transpose(0, 2, 1, 3)
    v = qkv[:, :, 2].transpose(0, 2, 1, 3)

    # 2) flash-style causal attention (attn_dropout = identity in eval)
    y = flash_attention(q, k, v)                                     # (B, H, S, D) bf16

    # 3) output projection (proj_dropout = identity in eval)
    y2d = y.transpose(0, 2, 1, 3).reshape(B * S, E)
    out = linear(y2d, wp, bp, x.dtype)                               # (B*S, E) f32
    return out.reshape(B, S, E)


def reference_mha(x, params, num_heads):
    """Pure-JAX f32 reference mirroring the PyTorch forward (dropout = identity)."""
    B, S, E = x.shape
    D = E // num_heads
    q = x @ params["wq"] + params["bq"]
    k = x @ params["wk"] + params["bk"]
    v = x @ params["wv"] + params["bv"]
    q = q.reshape(B, S, num_heads, D).transpose(0, 2, 1, 3)
    k = k.reshape(B, S, num_heads, D).transpose(0, 2, 1, 3)
    v = v.reshape(B, S, num_heads, D).transpose(0, 2, 1, 3)
    attn = jnp.einsum("bhqd,bhkd->bhqk", q, k) / math.sqrt(D)
    mask = jnp.tril(jnp.ones((S, S)))
    attn = jnp.where(mask == 0, -jnp.inf, attn)
    attn = jax.nn.softmax(attn, axis=-1)
    y = jnp.einsum("bhqk,bhkd->bhqd", attn, v)
    y = y.transpose(0, 2, 1, 3).reshape(B, S, E)
    return y @ params["wp"] + params["bp"]


if __name__ == "__main__":
    # config: embed_dim=32, num_heads=4, max_len >= seq, dropouts = 0 (eval)
    B, S, E, H = 2, 8, 32, 4

    key = jax.random.PRNGKey(0)
    keys = jax.random.split(key, 9)
    bound = 1.0 / math.sqrt(E)  # PyTorch nn.Linear init range

    def uinit(k, shape):
        return jax.random.uniform(k, shape, jnp.float32, -bound, bound)

    # Weights stored (in, out) == PyTorch weight.T, so kernels compute x @ W + b.
    params = {
        "wq": uinit(keys[0], (E, E)), "bq": uinit(keys[1], (1, E)),
        "wk": uinit(keys[2], (E, E)), "bk": uinit(keys[3], (1, E)),
        "wv": uinit(keys[4], (E, E)), "bv": uinit(keys[5], (1, E)),
        "wp": uinit(keys[6], (E, E)), "bp": uinit(keys[7], (1, E)),
    }
    x = jax.random.normal(keys[8], (B, S, E), jnp.float32)

    out = jax.block_until_ready(multihead_attention(x, params, H))
    ref = reference_mha(x, params, H)

    assert out.shape == (B, S, E)
    # bf16 MXU path vs f32 reference -> loose tolerance.
    assert jnp.allclose(out, ref, atol=2e-2, rtol=2e-2), (
        f"mismatch vs reference: max abs err {jnp.max(jnp.abs(out - ref)):.4e}")

    print("KERNEL_OK")
</pallas_src>

<mosaic_0001>
module attributes {stable_mosaic.version = 11 : i64} {
  func.func @linear_kernel(%arg0: i32, %arg1: memref<16x32xf32, #tpu.memory_space<vmem>>, %arg2: memref<32x96xbf16, #tpu.memory_space<vmem>>, %arg3: memref<1x96xf32, #tpu.memory_space<vmem>>, %arg4: memref<16x96xbf16, #tpu.memory_space<vmem>>) attributes {dimension_semantics = [#tpu.dimension_semantics<parallel>], iteration_bounds = array<i64: 1>, scalar_prefetch = 0 : i64, scratch_operands = 0 : i64, tpu.core_type = #tpu.core_type<tc>, window_params = [{transform_indices = @transform_0, window_bounds = array<i64: 16, 32>}, {pipeline_mode = #tpu.pipeline_mode<synchronous>, transform_indices = @transform_1, window_bounds = array<i64: 32, 96>}, {pipeline_mode = #tpu.pipeline_mode<synchronous>, transform_indices = @transform_2, window_bounds = array<i64: 1, 96>}, {transform_indices = @transform_3, window_bounds = array<i64: 16, 96>}]} {
    %c0 = arith.constant 0 : index
    %c0_0 = arith.constant 0 : index
    %0 = vector.load %arg1[%c0, %c0_0] : memref<16x32xf32, #tpu.memory_space<vmem>>, vector<16x32xf32>
    %1 = arith.truncf %0 : vector<16x32xf32> to vector<16x32xbf16>
    %c0_1 = arith.constant 0 : index
    %c0_2 = arith.constant 0 : index
    %2 = vector.load %arg2[%c0_1, %c0_2] : memref<32x96xbf16, #tpu.memory_space<vmem>>, vector<32x96xbf16>
    %cst = arith.constant dense<0.000000e+00> : vector<16x96xf32>
    %3 = tpu.matmul %1, %2, %cst {dimension_numbers = #tpu.dot_dimension_numbers<[1], [0], [0], [1], [0, 0, 1, 1], [], []>} : vector<16x32xbf16>, vector<32x96xbf16>, vector<16x96xf32> -> vector<16x96xf32>
    %c0_3 = arith.constant 0 : index
    %c0_4 = arith.constant 0 : index
    %4 = vector.load %arg3[%c0_3, %c0_4] : memref<1x96xf32, #tpu.memory_space<vmem>>, vector<1x96xf32>
    %5 = vector.broadcast %4 : vector<1x96xf32> to vector<16x96xf32>
    %6 = arith.addf %3, %5 : vector<16x96xf32>
    %7 = arith.truncf %6 : vector<16x96xf32> to vector<16x96xbf16>
    %c0_5 = arith.constant 0 : index
    %c0_6 = arith.constant 0 : index
    %8 = vector.load %arg4[%c0_5, %c0_6] : memref<16x96xbf16, #tpu.memory_space<vmem>>, vector<16x96xbf16>
    tpu.vector_store %arg4[%c0_5, %c0_6], %7 {strides = array<i32>} : memref<16x96xbf16, #tpu.memory_space<vmem>>, vector<16x96xbf16>,
    return
  }
  func.func @transform_0(%arg0: i32) -> (i32, i32) {
    %c0_i32 = arith.constant 0 : i32
    %c0_i32_0 = arith.constant 0 : i32
    return %arg0, %c0_i32 : i32, i32
  }
  func.func @transform_1(%arg0: i32) -> (i32, i32) {
    %c0_i32 = arith.constant 0 : i32
    %c0_i32_0 = arith.constant 0 : i32
    %c0_i32_1 = arith.constant 0 : i32
    return %c0_i32, %c0_i32_0 : i32, i32
  }
  func.func @transform_2(%arg0: i32) -> (i32, i32) {
    %c0_i32 = arith.constant 0 : i32
    %c0_i32_0 = arith.constant 0 : i32
    %c0_i32_1 = arith.constant 0 : i32
    return %c0_i32, %c0_i32_0 : i32, i32
  }
  func.func @transform_3(%arg0: i32) -> (i32, i32) {
    %c0_i32 = arith.constant 0 : i32
    %c0_i32_0 = arith.constant 0 : i32
    return %arg0, %c0_i32 : i32, i32
  }
}

</mosaic_0001>

<bundles_post_ra>
// kernel: tpu_custom_call.1
= control target key start
LH: loop header
LB: loop body
LE: loop exit
PB: predicated region body
PF: predicated region fallthrough
CT: control target
= control target key end

     0   :  { %8 = vsyncpa [#allocation3], 0  ;;  %s320_s0 = inlined_call_operand.hbm [shape: f32[16,32], index: 0, kind: input, shape index: {}]   ;;  %s321_s1 = inlined_call_operand.hbm [shape: bf16[32,96], index: 1, kind: input, shape index: {}]   ;;  %s322_s2 = inlined_call_operand.vmem [shape: f32[1,96], index: 2, kind: input, shape index: {}]   ;;  %s323_s3 = inlined_call_operand.hbm [shape: bf16[16,96], index: 3, kind: output, shape index: {}]  }
   0x1   :  { %9 = vsyncpa [#allocation6], 0 }
   0x2   :  { %10 = vsyncpa [#allocation4], 0  ;;  %s246_s12 = smov [#allocation2]   ;;  %s174_s16 = scalar_lea.hbm %s320_s0, 256 }
   0x3   :  { %s16_s13 = sshll.u32 %s246_s12, 4  ;;  %p175_p0 = scmp.ne.s32.totalorder %s320_s0, %s174_s16  ;;  %s17_s13 = int_to_ptr.vmem [resolvable:$true] %s16_s13 }
   0x4   :  { %p178_p1 = scmp.lt.u32.totalorder %s174_s16, %s320_s0 }
   0x6   :  { %p180_p2 = pnand %p178_p1, %p175_p0 }
   0x8   :  { %183 = shalt.err (!%p180_p2)
}
   0x9   :  { %s184_s21 = scalar_lea.vmem %s17_s13, 256  ;;  %p189_p4 = scmp.lt.s32.totalorder %s17_s13, %s17_s13 }
   0xa   :  { %p185_p3 = scmp.ne.s32.totalorder %s17_s13, %s184_s21  ;;  %p190_p5 = scmp.lt.s32.totalorder %s184_s21, %s184_s21 }
   0xc   :  { %p191_p6 = por %p190_p5, %p189_p4 }
   0xe   :  { %p192_p7 = pnand %p191_p6, %p185_p3 }
  0x10   :  { %195 = shalt.err (!%p192_p7)
}
  0x11   :  { %s247_s22 = smov 128   ;;  %s248_s23 = smov 8  }
  0x12   :  { %22 = dma.hbm_to_vmem [thread:$0]  %s320_s0, 256, %s17_s13, [#allocation3], %s247_s22, %s247_s22, %s248_s23  }
  0x13   :  { %s249_s26 = smov [#allocation5]   ;;  %s196_s30 = scalar_lea.hbm %s321_s1, 256 }
  0x14   :  { %s28_s27 = sshll.u32 %s249_s26, 4  ;;  %p197_p8 = scmp.ne.s32.totalorder %s321_s1, %s196_s30  ;;  %s29_s27 = int_to_ptr.vmem [resolvable:$true] %s28_s27 }
  0x15   :  { %p200_p9 = scmp.lt.u32.totalorder %s196_s30, %s321_s1 }
  0x17   :  { %p202_p10 = pnand %p200_p9, %p197_p8 }
  0x19   :  { %205 = shalt.err (!%p202_p10)
}
  0x1a   :  { %s206_s8 = scalar_lea.vmem %s29_s27, 256  ;;  %p211_p12 = scmp.lt.s32.totalorder %s29_s27, %s29_s27 }
  0x1b   :  { %p207_p11 = scmp.ne.s32.totalorder %s29_s27, %s206_s8  ;;  %p212_p13 = scmp.lt.s32.totalorder %s206_s8, %s206_s8 }
  0x1d   :  { %p213_p0 = por %p212_p13, %p211_p12 }
  0x1f   :  { %p214_p1 = pnand %p213_p0, %p207_p11 }
  0x21   :  { %217 = shalt.err (!%p214_p1)
}
  0x22   :  { %s250_s0 = smov 64   ;;  %s251_s9 = smov 4  }
  0x23   :  { %34 = dma.hbm_to_vmem [thread:$0]  %s321_s1, 256, %s29_s27, [#allocation6], %s250_s0, %s250_s0, %s251_s9  }
  0x24   :  { %240 = dma.done.wait [#allocation3], 256  }
  0x25   :  { %241 = vsyncadd [#allocation3], 4294967040 }
  0x26   :  { %242 = dma.done.wait [#allocation6], 256  }
  0x27   :  { %243 = vsyncadd [#allocation6], 4294967040  ;;  %v252_v0 = vmov 0.0   ;;  %vm253_vm0 = vmmov 0   ;;  %v172_v1 = vld [vmem:[#allocation5] sm:$0xff]   ;;  %v173_v2 = vld [vmem:[#allocation5 + $0x8] sm:$0xff]  }
  0x28   :  { %155 = vmatprep.subr.bf16.mxu0 %v252_v0  ;;  %159 = vmatprep.mubr.msk.bf16.mxu0 %vm253_vm0, %v252_v0  ;;  %v44_v3 = vld [vmem:[#allocation2] sm:$0xff]  ;;  %v45_v4 = vld [vmem:[#allocation2 + $0x8] sm:$0xff]  ;;  %vm70_vm1 = vcmask 261120   ;;  %vm123_vm2 = vcmask 781312   ;;  %s254_s13 = smov [#allocation7]  }
  0x29   :  { %156 = vmatpush3.bf16.msra.mxu0 %v172_v1  ;;  %v46_v5 = vpack.c.bf16 %v45_v4, %v44_v3  ;;  %v144_v6 = vld [vmem:[%s322_s2] ss:$0 sm:$0xff]  ;;  %s131_s14 = sshll.u32 %s254_s13, 4  ;;  %s132_s14 = int_to_ptr.vmem [resolvable:$true] %s131_s14 }
  0x2a   :  { %157 = vmatprep.subr.bf16.mxu0 %v252_v0  ;;  %s218_s15 = scalar_lea.vmem %s132_s14, 128  ;;  %p223_p3 = scmp.lt.s32.totalorder %s132_s14, %s132_s14 }
  0x2b   :  { %p219_p2 = scmp.ne.s32.totalorder %s132_s14, %s218_s15  ;;  %p224_p4 = scmp.lt.s32.totalorder %s218_s15, %s218_s15 }
  0x2d   :  { %158 = vmatpush3.bf16.msra.mxu0 %v173_v2  ;;  %p225_p5 = por %p224_p4, %p223_p3 }
  0x2f   :  { %p226_p6 = pnand %p225_p5, %p219_p2 }
  0x30   :  { %160 = vmatmul.mubr.msk.bf16.vlgmr.msra.gmra.mrb[0].mxu0 %vm70_vm1, %v46_v5 }
 0x103   :  { %v108_v7 = vpop.f32.mrb[0].mxu0 }
 0x104   :  { %v109_v8 = vadd.f32 %v144_v6, %v108_v7  ;;  %v161_v9 = vpop.f32.mrb[1].mxu0 }
 0x105   :  { %v111_v10 = vpop.f32.mrb[2].mxu0 }
 0x106   :  { %v150_v11 = vpack.c.bf16 %v109_v8, %v109_v8  ;;  %v112_v12 = vadd.f32 %v144_v6, %v111_v10  ;;  %v162_v13 = vpop.f32.mrb[3].mxu0 }
 0x108   :  { %v151_v14 = vpack.c.bf16 %v112_v12, %v112_v12  ;;  %124 = vst.msk [vmem:[#allocation7] sm:$0xf] %vm123_vm2, %v150_v11 }
 0x10a   :  { %125 = vst.msk [vmem:[#allocation7 + $0x4] sm:$0xf] %vm123_vm2, %v151_v14 }
 0x10b   :  { %229 = shalt.err (!%p226_p6)
}
 0x10c   :  { %s230_s17 = scalar_lea.hbm %s323_s3, 128 }
 0x10d   :  { %p231_p7 = scmp.ne.s32.totalorder %s323_s3, %s230_s17  ;;  %p234_p8 = scmp.lt.u32.totalorder %s230_s17, %s323_s3 }
 0x10f   :  { %p236_p9 = pnand %p234_p8, %p231_p7 }
 0x111   :  { %239 = shalt.err (!%p236_p9)
}
 0x112   :  { %137 = dma.vmem_to_hbm [thread:$0]  %s132_s14, 128, %s323_s3, [#allocation4], %s250_s0, %s250_s0, %s251_s9  }
 0x113   :  { %244 = dma.done.wait [#allocation4], 128  }
 0x114   :  { %245 = vsyncadd [#allocation4], 4294967168 }
 0x115   :  { %141 = vsyncpa [#allocation3], 1 }
 0x116   :  { %142 = vsyncpa [#allocation6], 1 }
 0x117   :  { %143 = vsyncpa [#allocation4], 1 }

</bundles_post_ra>
